<compile_context>
chip_gen: v5e
topology: v5e:2x2
jax: 0.10.0
libtpu: 0.0.40
codegen_flags: <defaults>
</compile_context>

<pallas_src>
import math

import jax
import jax.numpy as jnp
from jax import lax
from jax.experimental import pallas as pl
from jax.experimental.pallas import tpu as pltpu

LANE = 128
EPS = 1e-7
_SUB_ROWS = 512            # in-kernel sub-chunk height (keeps live temps small)
_MIB = 1024 * 1024


# --------------------------------------------------------------------------- #
# Hardware probing (best effort; every fallback is the safe/conservative one) #
# --------------------------------------------------------------------------- #
def _row_align(dtype) -> int:
    """Row (sublane) granularity for packed dtypes: f32 -> 8, bf16 -> 16, i8/bool -> 32."""
    return max(8, 32 // max(1, jnp.dtype(dtype).itemsize))


def _tpu_info():
    try:
        return pltpu.get_tpu_info()
    except Exception:
        return None


def _vmem_capacity_bytes(info) -> int:
    cap = getattr(info, "vmem_capacity_bytes", None) if info is not None else None
    if isinstance(cap, int) and cap > 0:
        return cap
    return 64 * _MIB          # conservative default (v7x-sized VMEM)


def _detect_num_tensorcores(info) -> int:
    """Return 2 only on a positively identified multi-TC chip (v7x); else 1."""
    if info is not None:
        for name in ("num_tensorcores", "tensorcore_count", "num_tensor_cores"):
            v = getattr(info, name, None)
            if isinstance(v, int) and v >= 1:
                return min(v, 2)
    try:
        kind = jax.devices()[0].device_kind.lower()
        if "v7" in kind or "7x" in kind:
            return 2
    except Exception:
        pass
    return 1


# --------------------------------------------------------------------------- #
# Kernel                                                                      #
# --------------------------------------------------------------------------- #
def _make_dice_kernel(*, tr, sub, tiles_per_core, rows, needs_mask):
    """Grid = (num_cores [core-parallel], tiles_per_core [reduction])."""
    n_sub = tr // sub

    def kernel(y_ref, t_ref, o_ref):
        i = pl.program_id(1)

        @pl.when(i == 0)
        def _init():
            o_ref[...] = jnp.zeros_like(o_ref)

        # First row this grid step is responsible for (static tr/tiles_per_core).
        row0 = (pl.program_id(0) * tiles_per_core + i) * tr
        zeros = jnp.zeros((8, LANE), jnp.float32)

        def chunk(j, carry, masked):
            inter, union = carry
            off = pl.multiple_of(j * sub, sub)
            y = y_ref[pl.ds(off, sub), :].astype(jnp.float32)
            t = t_ref[pl.ds(off, sub), :].astype(jnp.float32)
            # sigmoid(x) = 0.5 * (tanh(x/2) + 1): one EUP transcendental / element.
            p = 0.5 * (jnp.tanh(0.5 * y) + 1.0)
            if masked:
                rid = row0 + off + lax.broadcasted_iota(jnp.int32, (sub, 1), 0)
                valid = rid < rows
                p = jnp.where(valid, p, 0.0)
                t = jnp.where(valid, t, 0.0)
            # Reduce the major axis of a (sub//8, 8, 128) view: pure VPU adds,
            # no cross-lane work on the hot path.
            inter = inter + jnp.sum((p * t).reshape(sub // 8, 8, LANE), axis=0)
            union = union + jnp.sum((p + t).reshape(sub // 8, 8, LANE), axis=0)
            return inter, union

        def accumulate(masked):
            inter, union = lax.fori_loop(
                0, n_sub, lambda j, c: chunk(j, c, masked), (zeros, zeros),
                unroll=min(n_sub, 8))
            # Accumulate straight into the resident output block (rows 0:8 hold
            # the intersection partials, rows 8:16 the (p + t) union partials).
            o_ref[0, 0:8, :] = o_ref[0, 0:8, :] + inter
            o_ref[0, 8:16, :] = o_ref[0, 8:16, :] + union

        if needs_mask:
            is_full = row0 + tr <= rows          # rows/tr are static Python ints
            pl.when(is_full)(lambda: accumulate(False))
            pl.when(jnp.logical_not(is_full))(lambda: accumulate(True))
        else:
            accumulate(False)

    return kernel


def _dice_partial_sums(y2, t2, *, rows, align, tile_rows, num_cores):
    """Per-core (16,128) partial-sum slabs for y2/t2 of shape (rows, 128)."""
    info = _tpu_info()
    if num_cores is None:
        num_cores = _detect_num_tensorcores(info)
    num_cores = max(1, min(int(num_cores), 2))

    vmem_cap = _vmem_capacity_bytes(info)
    big_vmem = vmem_cap >= 100 * _MIB            # v5e/v6e: 128 MiB, v7x: 64 MiB

    max_item = max(jnp.dtype(y2.dtype).itemsize, jnp.dtype(t2.dtype).itemsize)
    if tile_rows is None:
        # Size blocks in BYTES (~8 MiB on big-VMEM chips, ~4 MiB on v7x) so the
        # ~0.35 us/step pipeline overhead is a small fraction of each step.
        target_block_bytes = (8 if big_vmem else 4) * _MIB
        tile_rows = target_block_bytes // (LANE * max_item)

    rows_per_core = pl.cdiv(rows, num_cores)
    # Block height: dtype-aligned, never larger than the array's row count.
    tr_cap = max(align, (rows_per_core // align) * align)
    tr = max(align, (min(int(tile_rows), tr_cap) // align) * align)
    sub = max(align, (min(_SUB_ROWS, tr) // align) * align)
    tr = max(sub, (tr // sub) * sub)             # tr is a multiple of sub

    tiles_per_core = pl.cdiv(rows_per_core, tr)
    needs_mask = num_cores * tiles_per_core * tr > rows
    last_block = (rows - 1) // tr

    def in_map(c, i):
        g = c * tiles_per_core + i
        if needs_mask:
            g = jnp.minimum(g, last_block)       # never issue a fully-OOB DMA
        return (g, 0)

    kernel = _make_dice_kernel(tr=tr, sub=sub, tiles_per_core=tiles_per_core,
                               rows=rows, needs_mask=needs_mask)

    if num_cores > 1:
        semantics = (pltpu.CORE_PARALLEL, pltpu.ARBITRARY)
    else:
        semantics = ("parallel", "arbitrary")

    return pl.pallas_call(
        kernel,
        out_shape=jax.ShapeDtypeStruct((num_cores, 16, LANE), jnp.float32),
        grid_spec=pltpu.PrefetchScalarGridSpec(
            num_scalar_prefetch=0,
            grid=(num_cores, tiles_per_core),
            in_specs=[pl.BlockSpec((tr, LANE), in_map),
                      pl.BlockSpec((tr, LANE), in_map)],
            out_specs=pl.BlockSpec((1, 16, LANE), lambda c, i: (c, 0, 0)),
        ),
        compiler_params=pltpu.CompilerParams(
            dimension_semantics=semantics,
            # 2 inputs x 2 pipeline buffers x (4-8 MiB) plus small temps.
            vmem_limit_bytes=(64 if big_vmem else 48) * _MIB,
        ),
    )(y2, t2)


# --------------------------------------------------------------------------- #
# Public wrapper                                                              #
# --------------------------------------------------------------------------- #
def global_dice_loss_with_logits(y, t, *, eps=EPS, tile_rows=None, num_cores=None):
    """loss = 1 - 2*sum(sigmoid(y)*t) / clamp(sum(sigmoid(y)) + sum(t), min=eps)."""
    assert y.shape == t.shape, "logits and targets must have the same shape"
    if t.dtype == jnp.bool_:
        t = t.astype(jnp.int8)                   # Mosaic-friendly, same byte width
    if y.dtype == jnp.bool_:
        y = y.astype(jnp.float32)

    n = math.prod(y.shape) if y.shape else 1
    y_flat = y.reshape(-1)                       # full reshape: bitcast, no HBM copy
    t_flat = t.reshape(-1)

    rows = n // LANE
    rem = n - rows * LANE
    align = max(_row_align(y.dtype), _row_align(t.dtype))

    def jnp_sums(yv, tv):
        p = jax.nn.sigmoid(yv.astype(jnp.float32))
        tf = tv.astype(jnp.float32)
        return jnp.sum(p * tf), jnp.sum(p) + jnp.sum(tf)

    if rows < align:
        # Too small for even one (align, 128) tile: pure-JAX path.
        inter, union_sum = jnp_sums(y_flat, t_flat)
    else:
        inter_tail = jnp.float32(0.0)
        union_tail = jnp.float32(0.0)
        if rem:
            # <128-element ragged tail: trivial fused jnp reduce.  (The prefix
            # slice below is the one unavoidable copy when n % 128 != 0.)
            inter_tail, union_tail = jnp_sums(y_flat[rows * LANE:],
                                              t_flat[rows * LANE:])
            y_main, t_main = y_flat[: rows * LANE], t_flat[: rows * LANE]
        else:
            y_main, t_main = y_flat, t_flat
        y2 = y_main.reshape(rows, LANE)
        t2 = t_main.reshape(rows, LANE)
        partials = _dice_partial_sums(y2, t2, rows=rows, align=align,
                                      tile_rows=tile_rows, num_cores=num_cores)
        inter = jnp.sum(partials[:, 0:8, :]) + inter_tail
        union_sum = jnp.sum(partials[:, 8:16, :]) + union_tail

    union = jnp.maximum(union_sum, jnp.float32(eps))
    return (1.0 - 2.0 * inter / union).astype(jnp.float32)


def _reference(y, t, eps=EPS):
    p = jax.nn.sigmoid(y.astype(jnp.float32))
    tf = t.astype(jnp.float32)
    union = jnp.maximum(jnp.sum(p) + jnp.sum(tf), eps)
    return 1.0 - 2.0 * jnp.sum(p * tf) / union


if __name__ == "__main__":
    key = jax.random.PRNGKey(0)
    k1, k2, k3, k4 = jax.random.split(key, 4)

    # NCHW logits + binary targets: 2*4*16*16 = 2048 elements (16 lane-rows).
    x_shape = (2, 4, 16, 16)
    y = jax.random.normal(k1, x_shape, dtype=jnp.float32)
    t = (jax.random.uniform(k2, x_shape) > 0.5).astype(jnp.float32)

    out = jax.block_until_ready(global_dice_loss_with_logits(y, t))
    ref = jax.block_until_ready(_reference(y, t))
    assert jnp.allclose(out, ref, atol=1e-5, rtol=1e-5), (out, ref)

    # Small tiles -> multiple grid steps: exercises accumulation into o_ref.
    out_multi = jax.block_until_ready(global_dice_loss_with_logits(y, t, tile_rows=8))
    assert jnp.allclose(out_multi, ref, atol=1e-5, rtol=1e-5), (out_multi, ref)

    # Ragged case: bf16 logits, rows not a multiple of the tile, <128-elem tail.
    shape2 = (5, 1000)                           # 5000 elems = 39 rows + 8-elem tail
    y2 = jax.random.normal(k3, shape2, dtype=jnp.bfloat16)
    t2 = (jax.random.uniform(k4, shape2) > 0.5).astype(jnp.float32)
    out2 = jax.block_until_ready(global_dice_loss_with_logits(y2, t2))
    ref2 = jax.block_until_ready(_reference(y2, t2))
    assert jnp.allclose(out2, ref2, atol=1e-4, rtol=1e-4), (out2, ref2)

    # Tiny odd shape -> pure-JAX fallback path.
    shape3 = (3, 5, 7)
    y3 = jax.random.normal(k1, shape3, dtype=jnp.float32)
    t3 = (jax.random.uniform(k2, shape3) > 0.5).astype(jnp.float32)
    out3 = jax.block_until_ready(global_dice_loss_with_logits(y3, t3))
    ref3 = jax.block_until_ready(_reference(y3, t3))
    assert jnp.allclose(out3, ref3, atol=1e-5, rtol=1e-5), (out3, ref3)

    print("KERNEL_OK")
</pallas_src>

<mosaic_0001>
module attributes {stable_mosaic.version = 11 : i64} {
  func.func @kernel(%arg0: i32, %arg1: i32, %arg2: memref<16x128xf32, #tpu.memory_space<vmem>>, %arg3: memref<16x128xf32, #tpu.memory_space<vmem>>, %arg4: memref<1x16x128xf32, #tpu.memory_space<vmem>>) attributes {dimension_semantics = [#tpu.dimension_semantics<parallel>, #tpu.dimension_semantics<arbitrary>], iteration_bounds = array<i64: 1, 1>, scalar_prefetch = 0 : i64, scratch_operands = 0 : i64, tpu.core_type = #tpu.core_type<tc>, window_params = [{transform_indices = @transform_0, window_bounds = array<i64: 16, 128>}, {transform_indices = @transform_1, window_bounds = array<i64: 16, 128>}, {transform_indices = @transform_2, window_bounds = array<i64: 1, 16, 128>}]} {
    %c0_i32 = arith.constant 0 : i32
    %0 = arith.cmpi eq, %arg1, %c0_i32 : i32
    %1 = arith.extui %0 : i1 to i32
    %c0_i32_0 = arith.constant 0 : i32
    %2 = arith.cmpi ne, %1, %c0_i32_0 : i32
    scf.if %2 {
      %cst_19 = arith.constant 0.000000e+00 : f32
      %37 = vector.broadcast %cst_19 : f32 to vector<1x16x128xf32>
      %c0_20 = arith.constant 0 : index
      %c0_21 = arith.constant 0 : index
      %c0_22 = arith.constant 0 : index
      %38 = vector.load %arg4[%c0_20, %c0_21, %c0_22] : memref<1x16x128xf32, #tpu.memory_space<vmem>>, vector<1x16x128xf32>
      tpu.vector_store %arg4[%c0_20, %c0_21, %c0_22], %37 {strides = array<i32>} : memref<1x16x128xf32, #tpu.memory_space<vmem>>, vector<1x16x128xf32>,
    } else {
    }
    %cst = arith.constant 0.000000e+00 : f32
    %3 = vector.broadcast %cst : f32 to vector<8x128xf32>
    %c0_i32_1 = arith.constant 0 : i32
    %c16_i32 = arith.constant 16 : i32
    %4 = arith.muli %c0_i32_1, %c16_i32 : i32
    %5 = tpu.assume_multiple %4, 16 : i32
    %6 = arith.index_cast %5 : i32 to index
    %c0 = arith.constant 0 : index
    %7 = vector.load %arg2[%6, %c0] : memref<16x128xf32, #tpu.memory_space<vmem>>, vector<16x128xf32>
    %8 = arith.index_cast %5 : i32 to index
    %c0_2 = arith.constant 0 : index
    %9 = vector.load %arg3[%8, %c0_2] : memref<16x128xf32, #tpu.memory_space<vmem>>, vector<16x128xf32>
    %cst_3 = arith.constant 5.000000e-01 : f32
    %10 = vector.broadcast %cst_3 : f32 to vector<16x128xf32>
    %11 = arith.mulf %10, %7 : vector<16x128xf32>
    %12 = math.tanh %11 : vector<16x128xf32>
    %cst_4 = arith.constant 1.000000e+00 : f32
    %13 = vector.broadcast %cst_4 : f32 to vector<16x128xf32>
    %14 = arith.addf %12, %13 : vector<16x128xf32>
    %cst_5 = arith.constant 5.000000e-01 : f32
    %15 = vector.broadcast %cst_5 : f32 to vector<16x128xf32>
    %16 = arith.mulf %15, %14 : vector<16x128xf32>
    %17 = arith.mulf %16, %9 : vector<16x128xf32>
    %18 = vector.shape_cast %17 : vector<16x128xf32> to vector<2x8x128xf32>
    %cst_6 = arith.constant dense<0.000000e+00> : vector<8x128xf32>
    %19 = vector.multi_reduction <add>, %18, %cst_6 [0] : vector<2x8x128xf32> to vector<8x128xf32>
    %20 = arith.addf %3, %19 : vector<8x128xf32>
    %21 = arith.addf %16, %9 : vector<16x128xf32>
    %22 = vector.shape_cast %21 : vector<16x128xf32> to vector<2x8x128xf32>
    %cst_7 = arith.constant dense<0.000000e+00> : vector<8x128xf32>
    %23 = vector.multi_reduction <add>, %22, %cst_7 [0] : vector<2x8x128xf32> to vector<8x128xf32>
    %24 = arith.addf %3, %23 : vector<8x128xf32>
    %c1_i32 = arith.constant 1 : i32
    %c0_8 = arith.constant 0 : index
    %c0_9 = arith.constant 0 : index
    %c0_10 = arith.constant 0 : index
    %25 = vector.load %arg4[%c0_8, %c0_9, %c0_10] : memref<1x16x128xf32, #tpu.memory_space<vmem>>, vector<1x8x128xf32>
    %26 = vector.shape_cast %25 : vector<1x8x128xf32> to vector<8x128xf32>
    %27 = arith.addf %26, %20 : vector<8x128xf32>
    %c0_11 = arith.constant 0 : index
    %c0_12 = arith.constant 0 : index
    %c0_13 = arith.constant 0 : index
    %28 = vector.load %arg4[%c0_11, %c0_12, %c0_13] : memref<1x16x128xf32, #tpu.memory_space<vmem>>, vector<1x8x128xf32>
    %29 = vector.shape_cast %28 : vector<1x8x128xf32> to vector<8x128xf32>
    %30 = vector.shape_cast %27 : vector<8x128xf32> to vector<1x8x128xf32>
    tpu.vector_store %arg4[%c0_11, %c0_12, %c0_13], %30 {strides = array<i32>} : memref<1x16x128xf32, #tpu.memory_space<vmem>>, vector<1x8x128xf32>,
    %c0_14 = arith.constant 0 : index
    %c8 = arith.constant 8 : index
    %c0_15 = arith.constant 0 : index
    %31 = vector.load %arg4[%c0_14, %c8, %c0_15] : memref<1x16x128xf32, #tpu.memory_space<vmem>>, vector<1x8x128xf32>
    %32 = vector.shape_cast %31 : vector<1x8x128xf32> to vector<8x128xf32>
    %33 = arith.addf %32, %24 : vector<8x128xf32>
    %c0_16 = arith.constant 0 : index
    %c8_17 = arith.constant 8 : index
    %c0_18 = arith.constant 0 : index
    %34 = vector.load %arg4[%c0_16, %c8_17, %c0_18] : memref<1x16x128xf32, #tpu.memory_space<vmem>>, vector<1x8x128xf32>
    %35 = vector.shape_cast %34 : vector<1x8x128xf32> to vector<8x128xf32>
    %36 = vector.shape_cast %33 : vector<8x128xf32> to vector<1x8x128xf32>
    tpu.vector_store %arg4[%c0_16, %c8_17, %c0_18], %36 {strides = array<i32>} : memref<1x16x128xf32, #tpu.memory_space<vmem>>, vector<1x8x128xf32>,
    return
  }
  func.func @transform_0(%arg0: i32, %arg1: i32) -> (i32, i32) {
    %c1_i32 = arith.constant 1 : i32
    %0 = arith.muli %arg0, %c1_i32 : i32
    %1 = arith.addi %0, %arg1 : i32
    %c0_i32 = arith.constant 0 : i32
    %c0_i32_0 = arith.constant 0 : i32
    return %1, %c0_i32 : i32, i32
  }
  func.func @transform_1(%arg0: i32, %arg1: i32) -> (i32, i32) {
    %c1_i32 = arith.constant 1 : i32
    %0 = arith.muli %arg0, %c1_i32 : i32
    %1 = arith.addi %0, %arg1 : i32
    %c0_i32 = arith.constant 0 : i32
    %c0_i32_0 = arith.constant 0 : i32
    return %1, %c0_i32 : i32, i32
  }
  func.func @transform_2(%arg0: i32, %arg1: i32) -> (i32, i32, i32) {
    %c0_i32 = arith.constant 0 : i32
    %c0_i32_0 = arith.constant 0 : i32
    %c0_i32_1 = arith.constant 0 : i32
    return %arg0, %c0_i32, %c0_i32_0 : i32, i32, i32
  }
}

</mosaic_0001>

<bundles_post_ra>
// kernel: tpu_custom_call.1
= control target key start
LH: loop header
LB: loop body
LE: loop exit
PB: predicated region body
PF: predicated region fallthrough
CT: control target
= control target key end

     0   :  { %7 = vsyncpa [#allocation3], 0  ;;  %s234_s0 = inlined_call_operand.hbm [shape: f32[16,128], index: 0, kind: input, shape index: {}]   ;;  %s235_s1 = inlined_call_operand.hbm [shape: f32[16,128], index: 1, kind: input, shape index: {}]   ;;  %s236_s2 = inlined_call_operand.hbm [shape: f32[1,16,128], index: 2, kind: output, shape index: {}]  }
   0x1   :  { %8 = vsyncpa [#allocation6], 0 }
   0x2   :  { %9 = vsyncpa [#allocation4], 0  ;;  %s18_s11 = sshll.u32 %s234_s0, 4  ;;  %s196_s12 = smov [#allocation2]   ;;  %s19_s11 = int_to_ptr.hbm [resolvable:$true] %s18_s11 }
   0x3   :  { %s20_s13 = sshll.u32 %s196_s12, 4  ;;  %s35_s16 = sshll.u32 %s235_s1, 4  ;;  %s21_s13 = int_to_ptr.vmem [resolvable:$true] %s20_s13  ;;  %s36_s16 = int_to_ptr.hbm [resolvable:$true] %s35_s16 }
   0x4   :  { %s197_s17 = smov 128   ;;  %s198_s18 = smov 8  }
   0x5   :  { %26 = dma.hbm_to_vmem [thread:$0]  %s19_s11, 256, %s21_s13, [#allocation3], %s197_s17, %s197_s17, %s198_s18  }
   0x6   :  { %s199_s19 = smov [#allocation5]  }
   0x7   :  { %s37_s20 = sshll.u32 %s199_s19, 4  ;;  %s38_s20 = int_to_ptr.vmem [resolvable:$true] %s37_s20 }
   0x8   :  { %43 = dma.hbm_to_vmem [thread:$0]  %s36_s16, 256, %s38_s20, [#allocation6], %s197_s17, %s197_s17, %s198_s18  }
   0x9   :  { %190 = dma.done.wait [#allocation3], 256  }
   0xa   :  { %191 = vsyncadd [#allocation3], 4294967040 }
   0xb   :  { %192 = dma.done.wait [#allocation6], 256  }
   0xc   :  { %193 = vsyncadd [#allocation6], 4294967040  ;;  %v62_v0 = vld [vmem:[#allocation2] sm:$0xff]  ;;  %v63_v1 = vld [vmem:[#allocation2 + $0x8] sm:$0xff]  ;;  %s200_s0 = smov [#allocation7]   ;;  %s94_s23 = sshll.u32 %s236_s2, 4  ;;  %s95_s23 = int_to_ptr.hbm [resolvable:$true] %s94_s23 }
   0xd   :  { %v66_v2 = vmul.f32 0.5, %v62_v0  ;;  %v67_v3 = vmul.f32 0.5, %v63_v1  ;;  %v64_v7 = vld [vmem:[#allocation5] sm:$0xff]  ;;  %v65_v9 = vld [vmem:[#allocation5 + $0x8] sm:$0xff]  ;;  %s92_s1 = sshll.u32 %s200_s0, 4  ;;  %s93_s1 = int_to_ptr.vmem [resolvable:$true] %s92_s1 }
   0xf   :  { %114 = vtanh.f32 %v66_v2 }
  0x10   :  { %116 = vtanh.f32 %v67_v3 }
  0x15   :  { %v115_v4 = vpop.eup %114 }
  0x16   :  { %v117_v5 = vpop.eup %116  ;;  %v70_v6 = vadd.f32 1.0, %v115_v4 }
  0x17   :  { %v71_v8 = vadd.f32 1.0, %v117_v5 }
  0x18   :  { %v72_v10 = vmul.f32 0.5, %v70_v6 }
  0x19   :  { %v73_v11 = vmul.f32 0.5, %v71_v8 }
  0x1a   :  { %v74_v12 = vmul.f32 %v72_v10, %v64_v7  ;;  %v78_v13 = vadd.f32 %v72_v10, %v64_v7 }
  0x1b   :  { %v75_v14 = vmul.f32 %v73_v11, %v65_v9  ;;  %v79_v15 = vadd.f32 %v73_v11, %v65_v9 }
  0x1d   :  { %v76_v16 = vadd.f32 %v75_v14, %v74_v12  ;;  %v80_v17 = vadd.f32 %v79_v15, %v78_v13 }
  0x1f   :  { %84 = vst [vmem:[#allocation7] sm:$0xff] %v76_v16 }
  0x20   :  { %87 = vst [vmem:[#allocation7 + $0x8] sm:$0xff] %v80_v17 }
  0x21   :  { %100 = dma.vmem_to_hbm [thread:$0]  %s93_s1, 256, %s95_s23, [#allocation4], %s197_s17, %s197_s17, %s198_s18  }
  0x22   :  { %194 = dma.done.wait [#allocation4], 256  }
  0x23   :  { %195 = vsyncadd [#allocation4], 4294967040 }
  0x24   :  { %105 = vsyncpa [#allocation3], 1 }
  0x25   :  { %106 = vsyncpa [#allocation6], 1 }
  0x26   :  { %107 = vsyncpa [#allocation4], 1 }

</bundles_post_ra>
